<compile_context>
chip_gen: v5e
topology: v5e:2x2
jax: 0.10.0
libtpu: 0.0.40
codegen_flags: <defaults>
</compile_context>

<pallas_src>
import jax
import jax.numpy as jnp
from jax.experimental import pallas as pl
from jax.experimental.pallas import tpu as pltpu


_MIN_VMEM_BYTES = 64 << 20  # assume the smallest (v7x-sized) VMEM if unknown


def _vmem_budget_bytes():
    """VMEM bytes we allow the resident-table fast path to use (per chip gen)."""
    cap = _MIN_VMEM_BYTES
    try:
        cap = int(getattr(pltpu.get_tpu_info(), "vmem_capacity_bytes", cap))
    except Exception:
        pass
    # Leave room for double-buffered output tiles, gather scratch and headroom:
    # v7x -> ~24 MiB, v5e/v6e -> ~56 MiB.
    return max(cap // 2 - (8 << 20), 16 << 20)


def _tile_scores(c_buf, x_buf, o_ref):
    """score[b] = <center_row[b], context_row[b]> for every row of the tile.

    Contracting the elementwise product against a ones row-vector sums over D
    *and* transposes the per-row results onto the lane axis, so the whole
    (1, TB) output tile is produced lane-dense and written with a single store.
    """
    d = c_buf.shape[1]
    prod = c_buf[...].astype(jnp.float32) * x_buf[...].astype(jnp.float32)
    ones_row = jnp.ones((1, d), jnp.float32)
    scores = jax.lax.dot_general(
        ones_row, prod,
        dimension_numbers=(((1,), (1,)), ((), ())),   # contract over D
        precision=jax.lax.Precision.HIGHEST,          # keep full f32 accuracy
        preferred_element_type=jnp.float32)           # -> (1, TB)
    o_ref[...] = scores.astype(o_ref.dtype)


def _make_resident_kernel(batch, tile_b):
    """Small-vocab fast path: tables live in VMEM for the whole kernel; each
    row gather is an in-VMEM dynamic-slice read (no per-row HBM DMA)."""

    def kernel(c_idx_ref, x_idx_ref, in_tab_ref, out_tab_ref, o_ref,
               c_buf, x_buf):
        t = pl.program_id(0)
        base = t * tile_b
        n_valid = jnp.minimum(tile_b, batch - base)   # skip padded tail rows

        @pl.loop(0, n_valid)
        def _(r):
            c = c_idx_ref[base + r]
            x = x_idx_ref[base + r]
            c_buf[pl.ds(r, 1), :] = in_tab_ref[pl.ds(c, 1), :]
            x_buf[pl.ds(r, 1), :] = out_tab_ref[pl.ds(x, 1), :]

        # Rows >= n_valid hold stale scratch; their output lanes are sliced off
        # by the wrapper, so no masking is needed here.
        _tile_scores(c_buf, x_buf, o_ref)

    return kernel


def _make_gather_kernel(batch, tile_b, depth):
    """Large-vocab path: tables stay in HBM; rows are gathered with a manual
    `depth`-deep pipeline of async copies so their latency overlaps."""

    def kernel(c_idx_ref, x_idx_ref, in_hbm_ref, out_hbm_ref, o_ref,
               c_buf, x_buf, c_sem, x_sem):
        t = pl.program_id(0)
        base = t * tile_b
        n_valid = jnp.minimum(tile_b, batch - base)

        def c_copy(r):
            return pltpu.make_async_copy(
                in_hbm_ref.at[c_idx_ref[base + r]], c_buf.at[r],
                c_sem.at[r % depth])

        def x_copy(r):
            return pltpu.make_async_copy(
                out_hbm_ref.at[x_idx_ref[base + r]], x_buf.at[r],
                x_sem.at[r % depth])

        # Prime up to `depth` row gathers per table.
        @pl.loop(0, depth)
        def _(r):
            @pl.when(r < n_valid)
            def _():
                c_copy(r).start()
                x_copy(r).start()

        # Steady state: land row r, then refill its semaphore slot with row
        # r + depth, keeping `depth` gathers in flight per table.
        @pl.loop(0, n_valid)
        def _(r):
            c_copy(r).wait()
            x_copy(r).wait()

            @pl.when(r + depth < n_valid)
            def _():
                c_copy(r + depth).start()
                x_copy(r + depth).start()

        _tile_scores(c_buf, x_buf, o_ref)

    return kernel


def skipgram_forward(center, context, in_emb, out_emb):
    """center, context: (B,) int; in_emb, out_emb: (V, D) -> (B,) f32 scores."""
    V, D = in_emb.shape
    B = int(center.shape[0])
    itemsize = jnp.dtype(in_emb.dtype).itemsize

    # One grid step per batch tile.  TB=128 keeps every output tile a full
    # 128-lane row (dense stores; >=2 "parallel" tiles for v7x's two cores once
    # B > 128).  Small batches use a single full-batch tile so every block
    # exactly equals the full array (always layout-legal).
    TB = 128 if B > 128 else B
    B_pad = -(-B // TB) * TB
    num_tiles = B_pad // TB

    # Indices go to SMEM via scalar prefetch; clamp so a bad index can never
    # become an unchecked OOB access (torch.nn.Embedding would raise instead).
    c_idx = jnp.clip(center.astype(jnp.int32), 0, V - 1)
    x_idx = jnp.clip(context.astype(jnp.int32), 0, V - 1)
    if B_pad != B:
        pad = B_pad - B
        c_idx = jnp.concatenate([c_idx, jnp.zeros((pad,), jnp.int32)])
        x_idx = jnp.concatenate([x_idx, jnp.zeros((pad,), jnp.int32)])

    # Fast-path eligibility: both tables (double-buffered by the pipeline) plus
    # gather scratch and output tiles must fit the per-generation VMEM budget.
    table_bytes = 2 * 2 * V * D * itemsize            # 2 tables x 2 buffers
    scratch_bytes = 2 * TB * D * itemsize + 4 * TB * 4
    vmem_needed = table_bytes + scratch_bytes
    use_resident = vmem_needed <= _vmem_budget_bytes()

    out_spec = pl.BlockSpec((1, TB), lambda t, c_ref, x_ref: (0, t))

    if use_resident:
        grid_spec = pltpu.PrefetchScalarGridSpec(
            num_scalar_prefetch=2,
            grid=(num_tiles,),
            in_specs=[
                # Constant block index => each table is DMA'd into VMEM once
                # and stays resident across all batch tiles.
                pl.BlockSpec((V, D), lambda t, c_ref, x_ref: (0, 0)),
                pl.BlockSpec((V, D), lambda t, c_ref, x_ref: (0, 0)),
            ],
            out_specs=out_spec,
            scratch_shapes=[
                pltpu.VMEM((TB, D), in_emb.dtype),
                pltpu.VMEM((TB, D), out_emb.dtype),
            ],
        )
        kernel = _make_resident_kernel(B, TB)
        compiler_params = pltpu.CompilerParams(
            dimension_semantics=("parallel",),
            vmem_limit_bytes=max(16 << 20, int(vmem_needed) + (8 << 20)))
    else:
        depth = min(8, TB)   # row-gather DMAs kept in flight per table
        grid_spec = pltpu.PrefetchScalarGridSpec(
            num_scalar_prefetch=2,
            grid=(num_tiles,),
            in_specs=[
                pl.BlockSpec(memory_space=pl.ANY),   # tables stay in HBM
                pl.BlockSpec(memory_space=pl.ANY),
            ],
            out_specs=out_spec,
            scratch_shapes=[
                pltpu.VMEM((TB, D), in_emb.dtype),
                pltpu.VMEM((TB, D), out_emb.dtype),
                pltpu.SemaphoreType.DMA((depth,)),
                pltpu.SemaphoreType.DMA((depth,)),
            ],
        )
        kernel = _make_gather_kernel(B, TB, depth)
        compiler_params = pltpu.CompilerParams(
            dimension_semantics=("parallel",))

    out = pl.pallas_call(
        kernel,
        out_shape=jax.ShapeDtypeStruct((1, B_pad), jnp.float32),
        grid_spec=grid_spec,
        compiler_params=compiler_params,
    )(c_idx, x_idx, in_emb, out_emb)

    return out[0, :B]


if __name__ == "__main__":
    vocab_size = 64
    embedding_dim = 32
    batch = 8

    key = jax.random.PRNGKey(0)
    k_in, k_out, k_c, k_x = jax.random.split(key, 4)

    # nn.Embedding default init: N(0, 1)
    in_embeddings = jax.random.normal(k_in, (vocab_size, embedding_dim), jnp.float32)
    out_embeddings = jax.random.normal(k_out, (vocab_size, embedding_dim), jnp.float32)

    center = jax.random.randint(k_c, (batch,), 0, vocab_size, jnp.int32)
    context = jax.random.randint(k_x, (batch,), 0, vocab_size, jnp.int32)

    score = skipgram_forward(center, context, in_embeddings, out_embeddings)
    score = jax.block_until_ready(score)

    # Reference check in plain JAX (same math as the PyTorch module).  Tolerance
    # leaves a little slack for MXU multi-pass f32 accumulation order.
    ref = jnp.sum(in_embeddings[center] * out_embeddings[context], axis=1)
    assert score.shape == (batch,)
    assert jnp.allclose(score, ref, atol=1e-3, rtol=1e-3), (score, ref)

    print("KERNEL_OK")
</pallas_src>

<mosaic_0001>
module attributes {stable_mosaic.version = 11 : i64} {
  func.func @kernel(%arg0: i32, %arg1: memref<8xi32, #tpu.memory_space<smem>>, %arg2: memref<8xi32, #tpu.memory_space<smem>>, %arg3: memref<64x32xf32, #tpu.memory_space<vmem>>, %arg4: memref<64x32xf32, #tpu.memory_space<vmem>>, %arg5: memref<1x8xf32, #tpu.memory_space<vmem>>, %arg6: memref<8x32xf32, #tpu.memory_space<vmem>>, %arg7: memref<8x32xf32, #tpu.memory_space<vmem>>) attributes {dimension_semantics = [#tpu.dimension_semantics<parallel>], iteration_bounds = array<i64: 1>, scalar_prefetch = 2 : i64, scratch_operands = 2 : i64, tpu.core_type = #tpu.core_type<tc>, window_params = [{pipeline_mode = #tpu.pipeline_mode<synchronous>, transform_indices = @transform_0, window_bounds = array<i64: 64, 32>}, {pipeline_mode = #tpu.pipeline_mode<synchronous>, transform_indices = @transform_1, window_bounds = array<i64: 64, 32>}, {transform_indices = @transform_2, window_bounds = array<i64: 1, 8>}]} {
    %c8_i32 = arith.constant 8 : i32
    %0 = arith.muli %arg0, %c8_i32 : i32
    %c8_i32_0 = arith.constant 8 : i32
    %1 = arith.subi %c8_i32_0, %0 : i32
    %c8_i32_1 = arith.constant 8 : i32
    %2 = arith.minsi %c8_i32_1, %1 : i32
    %c0_i32 = arith.constant 0 : i32
    %3 = arith.subi %2, %c0_i32 : i32
    %c1_i32 = arith.constant 1 : i32
    %c1_i32_2 = arith.constant 1 : i32
    %4 = arith.subi %c1_i32, %c1_i32_2 : i32
    %5 = arith.addi %3, %4 : i32
    %c1_i32_3 = arith.constant 1 : i32
    %6 = arith.divsi %5, %c1_i32_3 : i32
    %c1_i32_4 = arith.constant 1 : i32
    %c0_i32_5 = arith.constant 0 : i32
    %c0_i32_6 = arith.constant 0 : i32
    %7 = arith.subi %6, %c0_i32_6 : i32
    %8 = arith.addi %c0_i32_6, %7 : i32
    %c1_i32_7 = arith.constant 1 : i32
    scf.for %arg8 = %c0_i32_6 to %8 step %c1_i32_7  : i32 {
      %15 = arith.muli %arg8, %c1_i32_4 : i32
      %16 = arith.addi %c0_i32_5, %15 : i32
      %17 = arith.addi %0, %16 : i32
      %18 = arith.index_cast %17 : i32 to index
      %19 = memref.load %arg1[%18] : memref<8xi32, #tpu.memory_space<smem>>
      %20 = arith.addi %0, %16 : i32
      %21 = arith.index_cast %20 : i32 to index
      %22 = memref.load %arg2[%21] : memref<8xi32, #tpu.memory_space<smem>>
      %23 = arith.index_cast %19 : i32 to index
      %c0_14 = arith.constant 0 : index
      %24 = vector.load %arg3[%23, %c0_14] : memref<64x32xf32, #tpu.memory_space<vmem>>, vector<1x32xf32>
      %25 = arith.index_cast %16 : i32 to index
      %c0_15 = arith.constant 0 : index
      %26 = vector.load %arg6[%25, %c0_15] : memref<8x32xf32, #tpu.memory_space<vmem>>, vector<1x32xf32>
      tpu.vector_store %arg6[%25, %c0_15], %24 {strides = array<i32>} : memref<8x32xf32, #tpu.memory_space<vmem>>, vector<1x32xf32>,
      %27 = arith.index_cast %22 : i32 to index
      %c0_16 = arith.constant 0 : index
      %28 = vector.load %arg4[%27, %c0_16] : memref<64x32xf32, #tpu.memory_space<vmem>>, vector<1x32xf32>
      %29 = arith.index_cast %16 : i32 to index
      %c0_17 = arith.constant 0 : index
      %30 = vector.load %arg7[%29, %c0_17] : memref<8x32xf32, #tpu.memory_space<vmem>>, vector<1x32xf32>
      tpu.vector_store %arg7[%29, %c0_17], %28 {strides = array<i32>} : memref<8x32xf32, #tpu.memory_space<vmem>>, vector<1x32xf32>,
    }
    %c0 = arith.constant 0 : index
    %c0_8 = arith.constant 0 : index
    %9 = vector.load %arg6[%c0, %c0_8] : memref<8x32xf32, #tpu.memory_space<vmem>>, vector<8x32xf32>
    %c0_9 = arith.constant 0 : index
    %c0_10 = arith.constant 0 : index
    %10 = vector.load %arg7[%c0_9, %c0_10] : memref<8x32xf32, #tpu.memory_space<vmem>>, vector<8x32xf32>
    %11 = arith.mulf %9, %10 : vector<8x32xf32>
    %cst = arith.constant 1.000000e+00 : f32
    %12 = vector.broadcast %cst : f32 to vector<1x32xf32>
    %cst_11 = arith.constant dense<0.000000e+00> : vector<1x8xf32>
    %13 = tpu.matmul %12, %11, %cst_11 {dimension_numbers = #tpu.dot_dimension_numbers<[1], [1], [0], [0], [0, 0, 1, 0], [], []>, precision = #tpu.contract_precision<fp32>} : vector<1x32xf32>, vector<8x32xf32>, vector<1x8xf32> -> vector<1x8xf32>
    %c0_12 = arith.constant 0 : index
    %c0_13 = arith.constant 0 : index
    %14 = vector.load %arg5[%c0_12, %c0_13] : memref<1x8xf32, #tpu.memory_space<vmem>>, vector<1x8xf32>
    tpu.vector_store %arg5[%c0_12, %c0_13], %13 {strides = array<i32>} : memref<1x8xf32, #tpu.memory_space<vmem>>, vector<1x8xf32>,
    return
  }
  func.func @transform_0(%arg0: i32, %arg1: memref<8xi32, #tpu.memory_space<smem>>, %arg2: memref<8xi32, #tpu.memory_space<smem>>) -> (i32, i32) {
    %c0_i32 = arith.constant 0 : i32
    %c0_i32_0 = arith.constant 0 : i32
    %c0_i32_1 = arith.constant 0 : i32
    return %c0_i32, %c0_i32_0 : i32, i32
  }
  func.func @transform_1(%arg0: i32, %arg1: memref<8xi32, #tpu.memory_space<smem>>, %arg2: memref<8xi32, #tpu.memory_space<smem>>) -> (i32, i32) {
    %c0_i32 = arith.constant 0 : i32
    %c0_i32_0 = arith.constant 0 : i32
    %c0_i32_1 = arith.constant 0 : i32
    return %c0_i32, %c0_i32_0 : i32, i32
  }
  func.func @transform_2(%arg0: i32, %arg1: memref<8xi32, #tpu.memory_space<smem>>, %arg2: memref<8xi32, #tpu.memory_space<smem>>) -> (i32, i32) {
    %c0_i32 = arith.constant 0 : i32
    %c0_i32_0 = arith.constant 0 : i32
    return %c0_i32, %arg0 : i32, i32
  }
}

</mosaic_0001>

<bundles_post_ra>
// kernel: tpu_custom_call.1
= control target key start
LH: loop header
LB: loop body
LE: loop exit
PB: predicated region body
PF: predicated region fallthrough
CT: control target
= control target key end

     0   :  { %s308_s21 = smov [#allocation5]   ;;  %s309_s22 = smov [#allocation6]   ;;  %s358_s0 = inlined_call_operand.vmem [shape: s32[8], index: 0, kind: input, shape index: {}]   ;;  %s359_s2 = inlined_call_operand.vmem [shape: f32[64,32], index: 2, kind: input, shape index: {}]   ;;  %s360_s3 = inlined_call_operand.vmem [shape: f32[64,32], index: 3, kind: input, shape index: {}]   ;;  %s361_s4 = inlined_call_operand.hbm [shape: f32[1,8], index: 4, kind: output, shape index: {}]   ;;  %s362_s1 = inlined_call_operand.vmem [shape: s32[8], index: 1, kind: input, shape index: {}]  }
   0x1   :  { %s10_s17 = sshll.u32 %s358_s0, 4  ;;  %s15_s20 = sshll.u32 %s362_s1, 4  ;;  %s11_s17 = int_to_ptr.vmem [resolvable:$true] %s10_s17  ;;  %s16_s20 = int_to_ptr.vmem [resolvable:$true] %s15_s20 }
   0x2   :  { %13 = dma.vmem_to_smem %s11_s17, 16, %s308_s21, [#allocation4] }
   0x3   :  { %18 = dma.vmem_to_smem %s16_s20, 16, %s309_s22, [#allocation4] }
   0x4   :  { %300 = dma.done.wait [#allocation4], 32 }
   0x5   :  { %301 = vsyncadd [#allocation4], 4294967264 }
   0x6   :  { %21 = sfence }
   0x7   :  { %22 = vsyncpa [#allocation8], 0  ;;  %s304_s23 = smov 0  }
   0x8 LB: > { %s38_s24 = sld [smem:[#allocation5 + %s306_s23]]  ;;  %vm43_vm0 = vcmask 253952   ;;  %s42_s30 = scalar_lea.vmem [#allocation2], %s306_s23  ;;  %s306_s23 = sphi %s304_s23, %s34_s23  }
   0x9   : > { %s39_s0 = sld [smem:[#allocation6 + %s306_s23]]  ;;  %s47_s5 = scalar_lea.vmem [#allocation3], %s306_s23 }
   0xa   : > { %s34_s23 = sadd.s32 1, %s306_s23  }
   0xb   : > { %p33_p0 = scmp.ge.s32.totalorder %s34_s23, 8 }
   0xc   :  { %vm52_vm1 = vcmask (%p33_p0), 261120   ;;  %v310_v5 = vmov (%p33_p0), 0   ;;  %v311_v17 = vmov (%p33_p0), 1.0   ;;  %s214_s8 = sshll.u32 (%p33_p0), %s361_s4, 4  ;;  %vm205_vm2 = vcmask (%p33_p0), 57344   ;;  %s215_s8 = int_to_ptr.hbm [resolvable:$true] %s214_s8 }
   0xd   :  { %36 = sbr.rel (!%p33_p0) target bundleno = 8 (0x8), region = 39  ;;  %v54_v6 = vsel (%p33_p0), %vm52_vm1, 1.0, %v310_v5 }
   0xe   : > { %s40_s1 = scalar_lea.vmem %s359_s2, %s38_s24  ;;  %v77_v7 = vsub.f32 (%p33_p0), %v54_v6, %v54_v6  ;;  %s312_s2 = smov (%p33_p0), [#allocation7]  }
   0xf   : > { %v41_v0 = vld [vmem:[%s40_s1] sm:$0x1]  ;;  %s45_s29 = scalar_lea.vmem %s360_s3, %s39_s0  ;;  %s212_s3 = sshll.u32 (%p33_p0), %s312_s2, 4  ;;  %s213_s3 = int_to_ptr.vmem [resolvable:$true] %s212_s3 }
  0x10   : > { %44 = vst.msk [vmem:[%s42_s30] sm:$0x1] %vm43_vm0, %v41_v0  ;;  %v46_v1 = vld [vmem:[%s45_s29] sm:$0x1]  ;;  %v78_v10 = vand.u32 (%p33_p0), 4294901760, %v77_v7 }
  0x11   : > { %48 = vst.msk [vmem:[%s47_s5] sm:$0x1] %vm43_vm0, %v46_v1 }
  0x12   :  { %v79_v12 = vsub.f32 %v77_v7, %v78_v10 }
  0x14   :  { %v80_v14 = vand.u32 4294901760, %v79_v12 }
  0x17   :  { %v49_v2 = vld [vmem:[#allocation2] sm:$0xff] }
  0x18   :  { %v50_v3 = vld [vmem:[#allocation3] sm:$0xff] }
  0x19   :  { %v51_v4 = vmul.f32 %v50_v3, %v49_v2 }
  0x1b   :  { %v57_v8 = vsel %vm52_vm1, %v51_v4, 0 }
  0x1c   :  { %v74_v9 = vand.u32 4294901760, %v57_v8 }
  0x1e   :  { %v101_v11 = vsub.f32 %v57_v8, %v74_v9  ;;  %75 = vmatpush.xpose.msra.mxu0 %v74_v9  ;;  %151 = vmatpush.xpose.msra.mxu3 %v74_v9 }
  0x20   :  { %128 = vmatpush.xpose.msra.mxu2 %v101_v11  ;;  %v102_v13 = vand.u32 4294901760, %v101_v11 }
  0x21   :  { %155 = vmatmul.f32.vlgmr.msra.gmra.mxu3 %v78_v10  ;;  %81 = vmatmul.f32.vlgmr.msra.gmra.mxu0 %v80_v14 }
  0x22   :  { %v103_v15 = vsub.f32 %v101_v11, %v102_v13  ;;  %177 = vmatpush.xpose.msrb.mxu0 %v102_v13 }
  0x23   :  { %131 = vmatmul.f32.vlgmr.msra.gmra.mxu2 %v77_v7 }
  0x24   :  { %v104_v16 = vand.u32 4294901760, %v103_v15 }
  0x26   :  { %105 = vmatpush.xpose.msra.mxu1 %v104_v16 }
  0x29   :  { %232 = vmatmul.msk.f32.vlgmr.msra.gmra.mxu1 %vm52_vm1, %v311_v17  ;;  %233 = vmatmul.msk.f32.vlgmr.msrb.gmra.mxu0 %vm52_vm1, %v311_v17 }
  0x2a   :  { %199 = vmatpush.xpose.msrb.mxu1 %v74_v9 }
  0x31   :  { %234 = vmatmul.msk.f32.vlgmr.msrb.gmra.mxu1 %vm52_vm1, %v311_v17 }
  0x9e   :  { %v82_v18 = vpop.f32.mrf.mxu0 }
  0xa4   :  { %v156_v22 = vpop.f32.mrf.mxu3 }
  0xa6   :  { %v108_v19 = vpop.f32.mrf.mxu1  ;;  %v132_v20 = vpop.f32.mrf.mxu2 }
  0xa7   :  { %v109_v21 = vadd.f32 %v108_v19, %v82_v18  ;;  %v180_v24 = vpop.f32.mrf.mxu0 }
  0xa9   :  { %v133_v23 = vadd.f32 %v132_v20, %v109_v21 }
  0xab   :  { %v157_v25 = vadd.f32 %v156_v22, %v133_v23 }
  0xad   :  { %v181_v26 = vadd.f32 %v180_v24, %v157_v25 }
  0xae   :  { %v202_v27 = vpop.f32.mrf.mxu1 }
  0xaf   :  { %v203_v28 = vadd.f32 %v202_v27, %v181_v26 }
  0xb1   :  { %206 = vst.msk [vmem:[#allocation7] sm:$0x1] %vm205_vm2, %v203_v28 }
  0xb2   :  { %217 = dma.vmem_to_hbm [thread:$0]  %s213_s3, 16, %s215_s8, [#allocation8]  }
  0xb3   :  { %302 = dma.done.wait [#allocation8], 16  }
  0xb4   :  { %303 = vsyncadd [#allocation8], 4294967280 }
  0xb5   :  { %222 = vsyncpa [#allocation8], 1 }

</bundles_post_ra>
